<compile_context>
chip_gen: v7x
topology: tpu7x:2x2x1
jax: 0.10.0
libtpu: 0.0.40
codegen_flags: <defaults>
</compile_context>

<pallas_src>
import functools

import jax
import jax.numpy as jnp
from jax import lax
from jax.experimental import pallas as pl
from jax.experimental.pallas import tpu as pltpu

INPUT_SIZE = 32
STRUCTURE = [64, 64]          # hidden widths
OUTPUT_SIZE = 32              # must equal INPUT_SIZE for the ODE state update
TIME_STEP = 0.01

LANE = 128                    # TPU lane width — pad hidden dims to this
SUBLANE = 8                   # sublane granularity for the batch tile
MAX_TILE_B = 1024             # cap on rows per batch tile


def _round_up(n, m):
    return (n + m - 1) // m * m


@functools.lru_cache(maxsize=1)
def _bf16_elementwise_default():
    """bf16 bias/ReLU only where the VPU is bf16-native (v6e / v7x)."""
    try:
        kind = jax.devices()[0].device_kind.lower()
    except Exception:
        return False
    return ("v6" in kind) or ("v7" in kind)


def _pad2(a, rows, cols, dtype):
    a = jnp.asarray(a)
    r, c = a.shape
    return jnp.pad(a, ((0, rows - r), (0, cols - c))).astype(dtype)


def prepare_params(params, *, bf16_elementwise=None):
    """Pad hidden dims to 128 lanes and cast to MXU/VPU-native dtypes, once.

    Zero-padded hidden lanes are inert: ReLU(0 + 0) = 0 and the matching weight
    rows are zero, so they contribute nothing to the result.
    """
    if bf16_elementwise is None:
        bf16_elementwise = _bf16_elementwise_default()
    w1, b1, w2, b2, w3, b3 = params
    D, H1 = w1.shape
    H2 = w2.shape[1]
    Dout = w3.shape[1]
    H1p = _round_up(H1, LANE)
    H2p = _round_up(H2, LANE)
    bias_dt = jnp.bfloat16 if bf16_elementwise else jnp.float32
    return (
        _pad2(w1, D, H1p, jnp.bfloat16),   # (D, H1p)
        _pad2(b1, 1, H1p, bias_dt),        # (1, H1p)
        _pad2(w2, H1p, H2p, jnp.bfloat16),  # (H1p, H2p)
        _pad2(b2, 1, H2p, bias_dt),        # (1, H2p)
        _pad2(w3, H2p, Dout, jnp.bfloat16),  # (H2p, D)
        _pad2(b3, 1, Dout, jnp.float32),   # (1, D) — kept f32 (feeds f32 RK4)
    )


def _node_rk4_kernel(num_steps, bf16_ew, dt_ref, x_ref,
                     w1_ref, b1_ref, w2_ref, b2_ref, w3_ref, b3_ref, o_ref):
    """num_steps RK4(3/8) steps for one batch tile; weights loaded once."""
    w1 = w1_ref[...]
    w2 = w2_ref[...]
    w3 = w3_ref[...]
    b1 = b1_ref[...]
    b2 = b2_ref[...]
    b3 = b3_ref[...]   # f32

    def net(y):
        # y: (tile_b, D) f32. bf16 MXU inputs, f32 accumulation.
        h = jnp.dot(y.astype(jnp.bfloat16), w1,
                    preferred_element_type=jnp.float32)
        if bf16_ew:
            # bf16 bias + ReLU (VPU bf16-native on v6e/v7x); h stays bf16 so
            # the next matmul needs no extra cast.
            h = jnp.maximum(h.astype(jnp.bfloat16) + b1, 0.0)
            h = jnp.dot(h, w2, preferred_element_type=jnp.float32)
            h = jnp.maximum(h.astype(jnp.bfloat16) + b2, 0.0)
            h = jnp.dot(h, w3, preferred_element_type=jnp.float32)
        else:
            # f32 elementwise path (v5e and older: no bf16 VALU).
            h = jnp.maximum(h + b1, 0.0)
            h = jnp.dot(h.astype(jnp.bfloat16), w2,
                        preferred_element_type=jnp.float32)
            h = jnp.maximum(h + b2, 0.0)
            h = jnp.dot(h.astype(jnp.bfloat16), w3,
                        preferred_element_type=jnp.float32)
        return h + b3   # (tile_b, D) f32

    def rk4_step(s, x):
        dt = dt_ref[0, s]
        dt_third = dt * jnp.float32(1.0 / 3.0)
        dt_eighth = dt * jnp.float32(0.125)
        # Kutta 3/8 rule, with dt/3*k1 computed once and reused.
        k1 = net(x)
        a = dt_third * k1
        k2 = net(x + a)
        k3 = net((x - a) + dt * k2)
        k4 = net(x + dt * ((k1 - k2) + k3))
        # Final state update kept in f32 for integrator accuracy.
        return x + dt_eighth * (k1 + 3.0 * (k2 + k3) + k4)

    x = x_ref[...].astype(jnp.float32)
    if num_steps <= 8:
        # Fully unrolled at trace time (LLO scheduler sees everything).
        for s in range(num_steps):
            x = rk4_step(s, x)
    else:
        # Unroll a little so step s's VPU epilogue overlaps step s+1's MXU pushes.
        x = lax.fori_loop(0, num_steps, rk4_step, x, unroll=2)
    o_ref[...] = x.astype(o_ref.dtype)


def node_forward(x, params=None, dt=TIME_STEP, *, num_steps=1, tile_b=None,
                 prepared=None, bf16_elementwise=None):
    """forward(x, t=None) of the NODE module.

    num_steps > 1 fuses that many RK4 steps (uniform scalar dt, or a length-
    num_steps dt vector) into a single pallas_call, keeping the state and the
    weights resident in VMEM; only the final state is returned. Pass
    `prepared=prepare_params(params)` to avoid re-padding weights every call.
    """
    assert num_steps >= 1
    if prepared is None:
        assert params is not None, "need params or prepared"
        prepared = prepare_params(params, bf16_elementwise=bf16_elementwise)
    w1p, b1p, w2p, b2p, w3p, b3p = prepared
    bf16_ew = (b1p.dtype == jnp.bfloat16)

    B, D = x.shape
    H1p = w1p.shape[1]
    H2p = w2p.shape[1]
    assert w1p.shape[0] == D
    assert w3p.shape[1] == D, "ODE state update requires output_size == input_size"

    # ---- Batch tiling: at least two tiles (v7x megacore), capped at 1024 rows.
    B8 = _round_up(B, SUBLANE)
    if tile_b is None:
        if B8 <= SUBLANE:
            tile_b = B8
        else:
            tile_b = min(MAX_TILE_B, _round_up(pl.cdiv(B8, 2), SUBLANE))
    tile_b = _round_up(tile_b, SUBLANE)
    Bp = _round_up(B, tile_b)
    n_tiles = Bp // tile_b

    # x stays unpadded in the feature dim; only the batch is rounded up.
    # NOTE: padded batch ROWS are not inert (net(0) != 0) — they burn cycles
    # but are sliced off below; never assume they stay zero.
    xp = x if Bp == B else jnp.pad(x, ((0, Bp - B), (0, 0)))

    # Per-step dt vector in SMEM (scalar dt broadcast to all steps).
    dt_arr = jnp.broadcast_to(
        jnp.asarray(dt, jnp.float32).reshape(-1), (num_steps,)
    ).reshape(1, num_steps)

    full = lambda i: (0, 0)   # weights/biases/dt replicated across batch tiles
    row = lambda i: (i, 0)

    # Advisory cost estimate (matmul flops dominate).
    mm_flops = 2 * Bp * (D * H1p + H1p * H2p + H2p * D)
    flops = int(num_steps * 4 * mm_flops)
    bytes_accessed = int(
        2 * Bp * D * jnp.dtype(x.dtype).itemsize          # x in + y out
        + (D * H1p + H1p * H2p + H2p * D) * 2             # bf16 weights
        + (H1p + H2p) * jnp.dtype(b1p.dtype).itemsize     # hidden biases
        + D * 4 + num_steps * 4)                          # b3 + dt

    yp = pl.pallas_call(
        functools.partial(_node_rk4_kernel, num_steps, bf16_ew),
        out_shape=jax.ShapeDtypeStruct((Bp, D), x.dtype),
        grid=(n_tiles,),
        in_specs=[
            pl.BlockSpec((1, num_steps), full, memory_space=pltpu.SMEM),  # dt
            pl.BlockSpec((tile_b, D), row),                               # x
            pl.BlockSpec((D, H1p), full),                                 # w1
            pl.BlockSpec((1, H1p), full),                                 # b1
            pl.BlockSpec((H1p, H2p), full),                               # w2
            pl.BlockSpec((1, H2p), full),                                 # b2
            pl.BlockSpec((H2p, D), full),                                 # w3
            pl.BlockSpec((1, D), full),                                   # b3
        ],
        out_specs=pl.BlockSpec((tile_b, D), row),
        input_output_aliases={1: 0},   # in-place state update when x is donated
        compiler_params=pltpu.CompilerParams(
            dimension_semantics=("parallel",)),
        cost_estimate=pl.CostEstimate(
            flops=flops, transcendentals=0, bytes_accessed=bytes_accessed),
    )(dt_arr, xp, w1p, b1p, w2p, b2p, w3p, b3p)

    return yp if Bp == B else yp[:B]


# TODO(synk): the `t is not None` branch returning the full trajectory over an
# arbitrary time grid is not implemented; only t=None (single RK4 step of size
# delta) and a fused fixed-step multi-step integration (final state only) are
# exposed.


def init_params(key, input_size, structure, output_size):
    """Deterministic init matching PyTorch nn.Linear default (U(-1/sqrt(in), +))."""
    dims = [input_size] + list(structure) + [output_size]
    params = []
    for i in range(len(dims) - 1):
        fan_in, fan_out = dims[i], dims[i + 1]
        key, kw, kb = jax.random.split(key, 3)
        bound = 1.0 / (fan_in ** 0.5)
        # stored as [in, out] (transposed vs torch's [out, in])
        w = jax.random.uniform(kw, (fan_in, fan_out), jnp.float32, -bound, bound)
        b = jax.random.uniform(kb, (1, fan_out), jnp.float32, -bound, bound)
        params.extend([w, b])
    return tuple(params)


def _reference_forward(x, params, dt):
    """Pure-JAX f32 reference (Kutta 3/8 rule, one step of size dt)."""
    w1, b1, w2, b2, w3, b3 = params

    def net(y):
        h = jnp.maximum(y @ w1 + b1, 0.0)
        h = jnp.maximum(h @ w2 + b2, 0.0)
        return h @ w3 + b3

    k1 = net(x)
    k2 = net(x + dt * k1 / 3.0)
    k3 = net(x + dt * (k2 - k1 / 3.0))
    k4 = net(x + dt * (k1 - k2 + k3))
    return x + dt * 0.125 * (k1 + 3.0 * (k2 + k3) + k4)


if __name__ == "__main__":
    key = jax.random.PRNGKey(0)
    kx, kp = jax.random.split(key)
    B = 40
    x = jax.random.normal(kx, (B, INPUT_SIZE), dtype=jnp.float32)
    params = init_params(kp, INPUT_SIZE, STRUCTURE, OUTPUT_SIZE)

    y_ref = _reference_forward(x, params, TIME_STEP)

    # Default tiling: batch split into two sublane-aligned tiles (40 -> 2x24),
    # unpadded (B, 32) HBM I/O, weights padded/cast once inside the call.
    y = jax.block_until_ready(node_forward(x, params, TIME_STEP))
    assert y.shape == (B, OUTPUT_SIZE)
    # bf16 MXU inputs => loosened tolerance vs. the f32 reference.
    assert jnp.allclose(y, y_ref, atol=5e-3, rtol=5e-3)

    # Pre-padded weights + forced small tiles (grid=(3,)): multi-tile path.
    prepared = prepare_params(params)
    y2 = jax.block_until_ready(
        node_forward(x, params, TIME_STEP, tile_b=16, prepared=prepared))
    assert jnp.allclose(y2, y_ref, atol=5e-3, rtol=5e-3)

    # Fused multi-step path: 3 RK4 steps inside one kernel, state in VMEM.
    y3 = jax.block_until_ready(
        node_forward(x, params, TIME_STEP, num_steps=3, prepared=prepared))
    y3_ref = x
    for _ in range(3):
        y3_ref = _reference_forward(y3_ref, params, TIME_STEP)
    assert jnp.allclose(y3, y3_ref, atol=5e-3, rtol=5e-3)

    print("KERNEL_OK")
</pallas_src>

<mosaic_0001>
module attributes {stable_mosaic.version = 11 : i64} {
  func.func @_node_rk4_kernel(%arg0: i32, %arg1: memref<1x1xf32, #tpu.memory_space<smem>>, %arg2: memref<24x32xf32, #tpu.memory_space<vmem>>, %arg3: memref<32x128xbf16, #tpu.memory_space<vmem>>, %arg4: memref<1x128xf32, #tpu.memory_space<vmem>>, %arg5: memref<128x128xbf16, #tpu.memory_space<vmem>>, %arg6: memref<1x128xf32, #tpu.memory_space<vmem>>, %arg7: memref<128x32xbf16, #tpu.memory_space<vmem>>, %arg8: memref<1x32xf32, #tpu.memory_space<vmem>>, %arg9: memref<24x32xf32, #tpu.memory_space<vmem>>) attributes {dimension_semantics = [#tpu.dimension_semantics<parallel>], iteration_bounds = array<i64: 2>, scalar_prefetch = 0 : i64, scratch_operands = 0 : i64, tpu.core_type = #tpu.core_type<tc>, window_params = [{transform_indices = @transform_0, window_bounds = array<i64: 1, 1>}, {transform_indices = @transform_1, window_bounds = array<i64: 24, 32>}, {pipeline_mode = #tpu.pipeline_mode<synchronous>, transform_indices = @transform_2, window_bounds = array<i64: 32, 128>}, {pipeline_mode = #tpu.pipeline_mode<synchronous>, transform_indices = @transform_3, window_bounds = array<i64: 1, 128>}, {pipeline_mode = #tpu.pipeline_mode<synchronous>, transform_indices = @transform_4, window_bounds = array<i64: 128, 128>}, {pipeline_mode = #tpu.pipeline_mode<synchronous>, transform_indices = @transform_5, window_bounds = array<i64: 1, 128>}, {pipeline_mode = #tpu.pipeline_mode<synchronous>, transform_indices = @transform_6, window_bounds = array<i64: 128, 32>}, {pipeline_mode = #tpu.pipeline_mode<synchronous>, transform_indices = @transform_7, window_bounds = array<i64: 1, 32>}, {transform_indices = @transform_8, window_bounds = array<i64: 24, 32>}]} {
    %c0 = arith.constant 0 : index
    %c0_0 = arith.constant 0 : index
    %0 = vector.load %arg3[%c0, %c0_0] : memref<32x128xbf16, #tpu.memory_space<vmem>>, vector<32x128xbf16>
    %c0_1 = arith.constant 0 : index
    %c0_2 = arith.constant 0 : index
    %1 = vector.load %arg5[%c0_1, %c0_2] : memref<128x128xbf16, #tpu.memory_space<vmem>>, vector<128x128xbf16>
    %c0_3 = arith.constant 0 : index
    %c0_4 = arith.constant 0 : index
    %2 = vector.load %arg7[%c0_3, %c0_4] : memref<128x32xbf16, #tpu.memory_space<vmem>>, vector<128x32xbf16>
    %c0_5 = arith.constant 0 : index
    %c0_6 = arith.constant 0 : index
    %3 = vector.load %arg4[%c0_5, %c0_6] : memref<1x128xf32, #tpu.memory_space<vmem>>, vector<1x128xf32>
    %c0_7 = arith.constant 0 : index
    %c0_8 = arith.constant 0 : index
    %4 = vector.load %arg6[%c0_7, %c0_8] : memref<1x128xf32, #tpu.memory_space<vmem>>, vector<1x128xf32>
    %c0_9 = arith.constant 0 : index
    %c0_10 = arith.constant 0 : index
    %5 = vector.load %arg8[%c0_9, %c0_10] : memref<1x32xf32, #tpu.memory_space<vmem>>, vector<1x32xf32>
    %c0_11 = arith.constant 0 : index
    %c0_12 = arith.constant 0 : index
    %6 = vector.load %arg2[%c0_11, %c0_12] : memref<24x32xf32, #tpu.memory_space<vmem>>, vector<24x32xf32>
    %c0_13 = arith.constant 0 : index
    %c0_14 = arith.constant 0 : index
    %7 = memref.load %arg1[%c0_13, %c0_14] : memref<1x1xf32, #tpu.memory_space<smem>>
    %cst = arith.constant 0.333333343 : f32
    %8 = arith.mulf %7, %cst : f32
    %cst_15 = arith.constant 1.250000e-01 : f32
    %9 = arith.mulf %7, %cst_15 : f32
    %10 = arith.truncf %6 : vector<24x32xf32> to vector<24x32xbf16>
    %cst_16 = arith.constant dense<0.000000e+00> : vector<24x128xf32>
    %11 = tpu.matmul %10, %0, %cst_16 {dimension_numbers = #tpu.dot_dimension_numbers<[1], [0], [0], [1], [0, 0, 1, 1], [], []>} : vector<24x32xbf16>, vector<32x128xbf16>, vector<24x128xf32> -> vector<24x128xf32>
    %12 = vector.broadcast %3 : vector<1x128xf32> to vector<24x128xf32>
    %13 = arith.addf %11, %12 : vector<24x128xf32>
    %cst_17 = arith.constant 0.000000e+00 : f32
    %14 = vector.broadcast %cst_17 : f32 to vector<24x128xf32>
    %15 = arith.maximumf %13, %14 : vector<24x128xf32>
    %16 = arith.truncf %15 : vector<24x128xf32> to vector<24x128xbf16>
    %cst_18 = arith.constant dense<0.000000e+00> : vector<24x128xf32>
    %17 = tpu.matmul %16, %1, %cst_18 {dimension_numbers = #tpu.dot_dimension_numbers<[1], [0], [0], [1], [0, 0, 1, 1], [], []>} : vector<24x128xbf16>, vector<128x128xbf16>, vector<24x128xf32> -> vector<24x128xf32>
    %18 = vector.broadcast %4 : vector<1x128xf32> to vector<24x128xf32>
    %19 = arith.addf %17, %18 : vector<24x128xf32>
    %cst_19 = arith.constant 0.000000e+00 : f32
    %20 = vector.broadcast %cst_19 : f32 to vector<24x128xf32>
    %21 = arith.maximumf %19, %20 : vector<24x128xf32>
    %22 = arith.truncf %21 : vector<24x128xf32> to vector<24x128xbf16>
    %cst_20 = arith.constant dense<0.000000e+00> : vector<24x32xf32>
    %23 = tpu.matmul %22, %2, %cst_20 {dimension_numbers = #tpu.dot_dimension_numbers<[1], [0], [0], [1], [0, 0, 1, 1], [], []>} : vector<24x128xbf16>, vector<128x32xbf16>, vector<24x32xf32> -> vector<24x32xf32>
    %24 = vector.broadcast %5 : vector<1x32xf32> to vector<24x32xf32>
    %25 = arith.addf %23, %24 : vector<24x32xf32>
    %26 = vector.broadcast %8 : f32 to vector<24x32xf32>
    %27 = arith.mulf %26, %25 : vector<24x32xf32>
    %28 = arith.addf %6, %27 : vector<24x32xf32>
    %29 = arith.truncf %28 : vector<24x32xf32> to vector<24x32xbf16>
    %cst_21 = arith.constant dense<0.000000e+00> : vector<24x128xf32>
    %30 = tpu.matmul %29, %0, %cst_21 {dimension_numbers = #tpu.dot_dimension_numbers<[1], [0], [0], [1], [0, 0, 1, 1], [], []>} : vector<24x32xbf16>, vector<32x128xbf16>, vector<24x128xf32> -> vector<24x128xf32>
    %31 = vector.broadcast %3 : vector<1x128xf32> to vector<24x128xf32>
    %32 = arith.addf %30, %31 : vector<24x128xf32>
    %cst_22 = arith.constant 0.000000e+00 : f32
    %33 = vector.broadcast %cst_22 : f32 to vector<24x128xf32>
    %34 = arith.maximumf %32, %33 : vector<24x128xf32>
    %35 = arith.truncf %34 : vector<24x128xf32> to vector<24x128xbf16>
    %cst_23 = arith.constant dense<0.000000e+00> : vector<24x128xf32>
    %36 = tpu.matmul %35, %1, %cst_23 {dimension_numbers = #tpu.dot_dimension_numbers<[1], [0], [0], [1], [0, 0, 1, 1], [], []>} : vector<24x128xbf16>, vector<128x128xbf16>, vector<24x128xf32> -> vector<24x128xf32>
    %37 = vector.broadcast %4 : vector<1x128xf32> to vector<24x128xf32>
    %38 = arith.addf %36, %37 : vector<24x128xf32>
    %cst_24 = arith.constant 0.000000e+00 : f32
    %39 = vector.broadcast %cst_24 : f32 to vector<24x128xf32>
    %40 = arith.maximumf %38, %39 : vector<24x128xf32>
    %41 = arith.truncf %40 : vector<24x128xf32> to vector<24x128xbf16>
    %cst_25 = arith.constant dense<0.000000e+00> : vector<24x32xf32>
    %42 = tpu.matmul %41, %2, %cst_25 {dimension_numbers = #tpu.dot_dimension_numbers<[1], [0], [0], [1], [0, 0, 1, 1], [], []>} : vector<24x128xbf16>, vector<128x32xbf16>, vector<24x32xf32> -> vector<24x32xf32>
    %43 = vector.broadcast %5 : vector<1x32xf32> to vector<24x32xf32>
    %44 = arith.addf %42, %43 : vector<24x32xf32>
    %45 = arith.subf %6, %27 : vector<24x32xf32>
    %46 = vector.broadcast %7 : f32 to vector<24x32xf32>
    %47 = arith.mulf %46, %44 : vector<24x32xf32>
    %48 = arith.addf %45, %47 : vector<24x32xf32>
    %49 = arith.truncf %48 : vector<24x32xf32> to vector<24x32xbf16>
    %cst_26 = arith.constant dense<0.000000e+00> : vector<24x128xf32>
    %50 = tpu.matmul %49, %0, %cst_26 {dimension_numbers = #tpu.dot_dimension_numbers<[1], [0], [0], [1], [0, 0, 1, 1], [], []>} : vector<24x32xbf16>, vector<32x128xbf16>, vector<24x128xf32> -> vector<24x128xf32>
    %51 = vector.broadcast %3 : vector<1x128xf32> to vector<24x128xf32>
    %52 = arith.addf %50, %51 : vector<24x128xf32>
    %cst_27 = arith.constant 0.000000e+00 : f32
    %53 = vector.broadcast %cst_27 : f32 to vector<24x128xf32>
    %54 = arith.maximumf %52, %53 : vector<24x128xf32>
    %55 = arith.truncf %54 : vector<24x128xf32> to vector<24x128xbf16>
    %cst_28 = arith.constant dense<0.000000e+00> : vector<24x128xf32>
    %56 = tpu.matmul %55, %1, %cst_28 {dimension_numbers = #tpu.dot_dimension_numbers<[1], [0], [0], [1], [0, 0, 1, 1], [], []>} : vector<24x128xbf16>, vector<128x128xbf16>, vector<24x128xf32> -> vector<24x128xf32>
    %57 = vector.broadcast %4 : vector<1x128xf32> to vector<24x128xf32>
    %58 = arith.addf %56, %57 : vector<24x128xf32>
    %cst_29 = arith.constant 0.000000e+00 : f32
    %59 = vector.broadcast %cst_29 : f32 to vector<24x128xf32>
    %60 = arith.maximumf %58, %59 : vector<24x128xf32>
    %61 = arith.truncf %60 : vector<24x128xf32> to vector<24x128xbf16>
    %cst_30 = arith.constant dense<0.000000e+00> : vector<24x32xf32>
    %62 = tpu.matmul %61, %2, %cst_30 {dimension_numbers = #tpu.dot_dimension_numbers<[1], [0], [0], [1], [0, 0, 1, 1], [], []>} : vector<24x128xbf16>, vector<128x32xbf16>, vector<24x32xf32> -> vector<24x32xf32>
    %63 = vector.broadcast %5 : vector<1x32xf32> to vector<24x32xf32>
    %64 = arith.addf %62, %63 : vector<24x32xf32>
    %65 = arith.subf %25, %44 : vector<24x32xf32>
    %66 = arith.addf %65, %64 : vector<24x32xf32>
    %67 = vector.broadcast %7 : f32 to vector<24x32xf32>
    %68 = arith.mulf %67, %66 : vector<24x32xf32>
    %69 = arith.addf %6, %68 : vector<24x32xf32>
    %70 = arith.truncf %69 : vector<24x32xf32> to vector<24x32xbf16>
    %cst_31 = arith.constant dense<0.000000e+00> : vector<24x128xf32>
    %71 = tpu.matmul %70, %0, %cst_31 {dimension_numbers = #tpu.dot_dimension_numbers<[1], [0], [0], [1], [0, 0, 1, 1], [], []>} : vector<24x32xbf16>, vector<32x128xbf16>, vector<24x128xf32> -> vector<24x128xf32>
    %72 = vector.broadcast %3 : vector<1x128xf32> to vector<24x128xf32>
    %73 = arith.addf %71, %72 : vector<24x128xf32>
    %cst_32 = arith.constant 0.000000e+00 : f32
    %74 = vector.broadcast %cst_32 : f32 to vector<24x128xf32>
    %75 = arith.maximumf %73, %74 : vector<24x128xf32>
    %76 = arith.truncf %75 : vector<24x128xf32> to vector<24x128xbf16>
    %cst_33 = arith.constant dense<0.000000e+00> : vector<24x128xf32>
    %77 = tpu.matmul %76, %1, %cst_33 {dimension_numbers = #tpu.dot_dimension_numbers<[1], [0], [0], [1], [0, 0, 1, 1], [], []>} : vector<24x128xbf16>, vector<128x128xbf16>, vector<24x128xf32> -> vector<24x128xf32>
    %78 = vector.broadcast %4 : vector<1x128xf32> to vector<24x128xf32>
    %79 = arith.addf %77, %78 : vector<24x128xf32>
    %cst_34 = arith.constant 0.000000e+00 : f32
    %80 = vector.broadcast %cst_34 : f32 to vector<24x128xf32>
    %81 = arith.maximumf %79, %80 : vector<24x128xf32>
    %82 = arith.truncf %81 : vector<24x128xf32> to vector<24x128xbf16>
    %cst_35 = arith.constant dense<0.000000e+00> : vector<24x32xf32>
    %83 = tpu.matmul %82, %2, %cst_35 {dimension_numbers = #tpu.dot_dimension_numbers<[1], [0], [0], [1], [0, 0, 1, 1], [], []>} : vector<24x128xbf16>, vector<128x32xbf16>, vector<24x32xf32> -> vector<24x32xf32>
    %84 = vector.broadcast %5 : vector<1x32xf32> to vector<24x32xf32>
    %85 = arith.addf %83, %84 : vector<24x32xf32>
    %86 = arith.addf %44, %64 : vector<24x32xf32>
    %cst_36 = arith.constant 3.000000e+00 : f32
    %87 = vector.broadcast %cst_36 : f32 to vector<24x32xf32>
    %88 = arith.mulf %87, %86 : vector<24x32xf32>
    %89 = arith.addf %25, %88 : vector<24x32xf32>
    %90 = arith.addf %89, %85 : vector<24x32xf32>
    %91 = vector.broadcast %9 : f32 to vector<24x32xf32>
    %92 = arith.mulf %91, %90 : vector<24x32xf32>
    %93 = arith.addf %6, %92 : vector<24x32xf32>
    %c0_37 = arith.constant 0 : index
    %c0_38 = arith.constant 0 : index
    %94 = vector.load %arg9[%c0_37, %c0_38] : memref<24x32xf32, #tpu.memory_space<vmem>>, vector<24x32xf32>
    tpu.vector_store %arg9[%c0_37, %c0_38], %93 {strides = array<i32>} : memref<24x32xf32, #tpu.memory_space<vmem>>, vector<24x32xf32>,
    return
  }
  func.func @transform_0(%arg0: i32) -> (i32, i32) {
    %c0_i32 = arith.constant 0 : i32
    %c0_i32_0 = arith.constant 0 : i32
    %c0_i32_1 = arith.constant 0 : i32
    return %c0_i32, %c0_i32_0 : i32, i32
  }
  func.func @transform_1(%arg0: i32) -> (i32, i32) {
    %c0_i32 = arith.constant 0 : i32
    %c0_i32_0 = arith.constant 0 : i32
    return %arg0, %c0_i32 : i32, i32
  }
  func.func @transform_2(%arg0: i32) -> (i32, i32) {
    %c0_i32 = arith.constant 0 : i32
    %c0_i32_0 = arith.constant 0 : i32
    %c0_i32_1 = arith.constant 0 : i32
    return %c0_i32, %c0_i32_0 : i32, i32
  }
  func.func @transform_3(%arg0: i32) -> (i32, i32) {
    %c0_i32 = arith.constant 0 : i32
    %c0_i32_0 = arith.constant 0 : i32
    %c0_i32_1 = arith.constant 0 : i32
    return %c0_i32, %c0_i32_0 : i32, i32
  }
  func.func @transform_4(%arg0: i32) -> (i32, i32) {
    %c0_i32 = arith.constant 0 : i32
    %c0_i32_0 = arith.constant 0 : i32
    %c0_i32_1 = arith.constant 0 : i32
    return %c0_i32, %c0_i32_0 : i32, i32
  }
  func.func @transform_5(%arg0: i32) -> (i32, i32) {
    %c0_i32 = arith.constant 0 : i32
    %c0_i32_0 = arith.constant 0 : i32
    %c0_i32_1 = arith.constant 0 : i32
    return %c0_i32, %c0_i32_0 : i32, i32
  }
  func.func @transform_6(%arg0: i32) -> (i32, i32) {
    %c0_i32 = arith.constant 0 : i32
    %c0_i32_0 = arith.constant 0 : i32
    %c0_i32_1 = arith.constant 0 : i32
    return %c0_i32, %c0_i32_0 : i32, i32
  }
  func.func @transform_7(%arg0: i32) -> (i32, i32) {
    %c0_i32 = arith.constant 0 : i32
    %c0_i32_0 = arith.constant 0 : i32
    %c0_i32_1 = arith.constant 0 : i32
    return %c0_i32, %c0_i32_0 : i32, i32
  }
  func.func @transform_8(%arg0: i32) -> (i32, i32) {
    %c0_i32 = arith.constant 0 : i32
    %c0_i32_0 = arith.constant 0 : i32
    return %arg0, %c0_i32 : i32, i32
  }
}

</mosaic_0001>

<bundles_post_ra>
// kernel: tpu_custom_call.1
= control target key start
LH: loop header
LB: loop body
LE: loop exit
PB: predicated region body
PF: predicated region fallthrough
CT: control target
= control target key end

     0   :  { %s1646_s29 = smov 0   ;;  %s2051_s0 = inlined_call_operand.<no memory space> [shape: f32[1,1], index: 0, kind: input, shape index: {}]   ;;  %s2052_s1 = inlined_call_operand.vmem [shape: f32[48,32], index: 1, kind: input, shape index: {}, may-alias: {1,8}]   ;;  %s2053_s2 = inlined_call_operand.vmem [shape: bf16[32,128], index: 2, kind: input, shape index: {}]   ;;  %s2054_s3 = inlined_call_operand.vmem [shape: f32[1,128], index: 3, kind: input, shape index: {}]   ;;  %s2055_s4 = inlined_call_operand.vmem [shape: bf16[128,128], index: 4, kind: input, shape index: {}]   ;;  %s2056_s5 = inlined_call_operand.vmem [shape: f32[1,128], index: 5, kind: input, shape index: {}]   ;;  %s2057_s6 = inlined_call_operand.vmem [shape: bf16[128,32], index: 6, kind: input, shape index: {}]   ;;  %s2058_s7 = inlined_call_operand.vmem [shape: f32[1,32], index: 7, kind: input, shape index: {}]   ;;  %s2059_s8 = inlined_call_operand.vmem [shape: f32[48,32], index: 8, kind: output, shape index: {}, may-alias: {1,8}]  }
   0x1   :  { %13 = sst [smem:[#allocation2]] %s2051_s0 }
   0x2 LB: > { %s1238_s30 = sadd.s32 4294967295, %s1596_s29   ;;  %p1242_p0 = scmp.ge.s32.totalorder %s1596_s29, 1  ;;  %s1596_s29 = sphi %s1646_s29, %s19_s29  }
   0x3   : > { %p264_p1 = scmp.lt.s32.totalorder %s1596_s29, 3 }
   0x5   : > { %p265_p2 = pnand %p1242_p0, %p264_p1 }
   0x6   : > { %v1657_v0 = vld [vmem:[%s2053_s2] sm:$0xff] (!%p265_p2)   ;;  %s298_s0 = smul.u32 (!%p265_p2), 3, %s1238_s30  ;;  %v1662_v1 = vld [vmem:[%s2053_s2 + $0x8] sm:$0xff] (!%p265_p2)   ;;  %v1686_v4 = vld [vmem:[%s2055_s4 + $0x10] sm:$0xff] (!%p265_p2)   ;;  %vm376_vm0 = vcmask (!%p265_p2), 261120   ;;  %s1838_s12 = sld [smem:[#allocation2]] (!%p265_p2) }
   0x7   : > { %268 = sbr.rel (%p265_p2) target bundleno = 2695 (0xa87), region = 52  ;;  %1372 = vmatprep.subr.bf16.mxu0 (!%p265_p2), %v1657_v0  ;;  %v1668_v2 = vld [vmem:[%s2055_s4] sm:$0xff] (!%p265_p2)   ;;  %v1674_v3 = vld [vmem:[%s2055_s4 + $0x8] sm:$0xff] (!%p265_p2)   ;;  %v1703_v8 = vld [vmem:[%s2055_s4 + $0x18] sm:$0xff] (!%p265_p2)  }
   0x8   : > { %p299_p3 = scmp.lt.s32.totalorder (!%p265_p2), %s298_s0, 5  ;;  %1373 = vmatpush3.bf16.msra.mxu0 (!%p265_p2), %v1657_v0  ;;  %1380 = vmatprep.subr.bf16.mxu1 (!%p265_p2), %v1668_v2  ;;  %v1716_v11 = vld [vmem:[%s2055_s4 + $0x20] sm:$0xff] (!%p265_p2)   ;;  %v1725_v12 = vld [vmem:[%s2055_s4 + $0x28] sm:$0xff] (!%p265_p2)   ;;  %v1733_v13 = vld [vmem:[%s2055_s4 + $0x30] sm:$0xff] (!%p265_p2)  }
   0x9   : > { %1374 = vmatprep.subr.bf16.mxu0 (!%p265_p2), %v1662_v1  ;;  %1381 = vmatpush3.bf16.msra.mxu1 (!%p265_p2), %v1668_v2  ;;  %v1740_v14 = vld [vmem:[%s2055_s4 + $0x38] sm:$0xff] (!%p265_p2)   ;;  %v1748_v15 = vld [vmem:[%s2057_s6] sm:$0xff] (!%p265_p2)   ;;  %v1753_v16 = vld [vmem:[%s2057_s6 + $0x8] sm:$0xff] (!%p265_p2)  }
   0xa   : > { %1382 = vmatprep.subr.bf16.mxu1 (!%p265_p2), %v1674_v3  ;;  %v1761_v17 = vld [vmem:[%s2057_s6 + $0x10] sm:$0xff] (!%p265_p2)   ;;  %v1768_v18 = vld [vmem:[%s2057_s6 + $0x18] sm:$0xff] (!%p265_p2)   ;;  %v1775_v19 = vld [vmem:[%s2057_s6 + $0x20] sm:$0xff] (!%p265_p2)  }
   0xb   : > { %v1782_v20 = vld [vmem:[%s2057_s6 + $0x28] sm:$0xff] (!%p265_p2)   ;;  %v1790_v21 = vld [vmem:[%s2054_s3] ss:$0 sm:$0xff] (!%p265_p2)  ;;  %v1802_v34 = vld [vmem:[%s2057_s6 + $0x30] sm:$0xff] (!%p265_p2)  }
   0xc   : > { %1375 = vmatpush3.bf16.msra.mxu0 (!%p265_p2), %v1662_v1  ;;  %v1809_v35 = vld [vmem:[%s2057_s6 + $0x38] sm:$0xff] (!%p265_p2)   ;;  %v1817_v36 = vld [vmem:[%s2056_s5] ss:$0 sm:$0xff] (!%p265_p2)  ;;  %s354_s13 = smul.f32 (!%p265_p2), 0.33333334, %s1838_s12 }
   0xd   : > { %1383 = vmatpush3.bf16.msra.mxu1 (!%p265_p2), %v1674_v3  ;;  %1400 = vmatprep.subr.bf16.mxu0 (!%p265_p2), %v1748_v15  ;;  %v1844_v49 = vld [vmem:[%s2058_s7] ss:$0 sm:$0xff] (!%p265_p2)  ;;  %s355_s16 = smul.f32 (!%p265_p2), 0.125, %s1838_s12 }
   0xe   : > { %s2061_s0 = smov (!%p299_p3, %s298_s0), 5  ;;  %1384 = vmatprep.subr.bf16.mxu1 %v1686_v4  ;;  %v645_v51 = vstv %s354_s13 }
   0xf   : > { %s1243_s17 = sshll.u32 %s2061_s0, 3 }
  0x10   : > { %s302_s22 = scalar_lea.vmem %s2052_s1, %s1243_s17  ;;  %s308_s20 = scalar_lea.vmem %s2059_s8, %s1243_s17 }
  0x11   : > { %v1694_v5 = vld [vmem:[%s302_s22] sm:$0xff]  ;;  %v1696_v6 = vld [vmem:[%s302_s22 + $0x8] sm:$0xff]  ;;  %v1698_v7 = vld [vmem:[%s302_s22 + $0x10] sm:$0xff]  ;;  %1385 = vmatpush3.bf16.msra.mxu1 %v1686_v4 }
  0x12   : > { %v356_v9 = vpack.c.bf16 %v1696_v6, %v1694_v5  ;;  %v357_v10 = vpack.c.bf16 %v1698_v7, %v1698_v7  ;;  %1386 = vmatprep.subr.bf16.mxu1 %v1703_v8 }
  0x14   : > { %1376 = vmatprep.mubr.msk.bf16.mxu0 %vm376_vm0, %v356_v9 }
  0x15   : > { %1377 = vmatmul.mubr.msk.bf16.vlgmr.msra.gmra.mrb[0].mxu0 %vm376_vm0, %v357_v10  ;;  %1387 = vmatpush3.bf16.msra.mxu1 %v1703_v8 }
  0x16   : > { %1388 = vmatprep.subr.bf16.mxu1 %v1716_v11  ;;  %1401 = vmatpush3.bf16.msra.mxu0 %v1748_v15 }
  0x17   : > { %1402 = vmatprep.subr.bf16.mxu0 %v1753_v16 }
  0x19   : > { %1389 = vmatpush3.bf16.msra.mxu1 %v1716_v11 }
  0x1a   : > { %1390 = vmatprep.subr.bf16.mxu1 %v1725_v12  ;;  %1403 = vmatpush3.bf16.msra.mxu0 %v1753_v16 }
  0x1b   : > { %1404 = vmatprep.subr.bf16.mxu0 %v1761_v17 }
  0x1d   : > { %1391 = vmatpush3.bf16.msra.mxu1 %v1725_v12 }
  0x1e   : > { %1392 = vmatprep.subr.bf16.mxu1 %v1733_v13  ;;  %1405 = vmatpush3.bf16.msra.mxu0 %v1761_v17 }
  0x1f   : > { %1406 = vmatprep.subr.bf16.mxu0 %v1768_v18 }
  0x21   : > { %1393 = vmatpush3.bf16.msra.mxu1 %v1733_v13 }
  0x22   : > { %1394 = vmatprep.subr.bf16.mxu1 %v1740_v14  ;;  %1407 = vmatpush3.bf16.msra.mxu0 %v1768_v18 }
  0x23   : > { %1408 = vmatprep.subr.bf16.mxu0 %v1775_v19 }
  0x25   : > { %1395 = vmatpush3.bf16.msra.mxu1 %v1740_v14 }
  0x26   : > { %1420 = vmatprep.subr.bf16.mxu1 %v1657_v0  ;;  %1409 = vmatpush3.bf16.msra.mxu0 %v1775_v19 }
  0x27   : > { %1410 = vmatprep.subr.bf16.mxu0 %v1782_v20 }
  0x2a   : > { %1411 = vmatpush3.bf16.msra.mxu0 %v1782_v20 }
  0x2b   : > { %1412 = vmatprep.subr.bf16.mxu0 %v1802_v34 }
  0x2e   : > { %1413 = vmatpush3.bf16.msra.mxu0 %v1802_v34 }
  0x2f   : > { %1414 = vmatprep.subr.bf16.mxu0 %v1809_v35 }
  0x32   : > { %1415 = vmatpush3.bf16.msra.mxu0 %v1809_v35 }
  0x33   : > { %1428 = vmatprep.subr.bf16.mxu0 %v1668_v2 }
  0xe8   : > { %v1378_v22 = vpop.f32.mrb[0].mxu0 }
  0xe9   : > { %v426_v23 = vadd.f32 %v1378_v22, %v1790_v21  ;;  %v417_v24 = vpop.f32.mrb[1].mxu0 }
  0xea   : > { %v418_v25 = vadd.f32 %v1790_v21, %v417_v24  ;;  %v1379_v26 = vpop.f32.mrb[2].mxu0 }
  0xeb   : > { %v420_v27 = vpop.f32.mrb[3].mxu0  ;;  %v433_v29 = vmax.f32 %v426_v23, 0.0 }
  0xec   : > { %v421_v28 = vadd.f32 %v1790_v21, %v420_v27  ;;  %v431_v30 = vmax.f32 %v418_v25, 0.0 }
  0xed   : > { %v435_v33 = vpack.c.bf16 %v433_v29, %v433_v29 }
  0xee   : > { %v432_v31 = vmax.f32 %v421_v28, 0.0 }
  0xf0   : > { %v434_v32 = vpack.c.bf16 %v432_v31, %v431_v30 }
  0xf2   : > { %1396 = vmatprep.mubr.bf16.mxu1 %v434_v32 }
  0xf3   : > { %1397 = vmatmul.mubr.bf16.vlgmr.msra.gmra.mrb[0].mxu1 %v435_v33 }
  0xf4   : > { %1421 = vmatpush3.bf16.msra.mxu1 %v1657_v0 }
  0xf5   : > { %1422 = vmatprep.subr.bf16.mxu1 %v1662_v1 }
  0xf8   : > { %1423 = vmatpush3.bf16.msra.mxu1 %v1662_v1 }
  0xf9   : > { %1448 = vmatprep.subr.bf16.mxu1 %v1748_v15 }
 0x1c6   : > { %v1398_v37 = vpop.f32.mrb[0].mxu1 }
 0x1c7   : > { %v533_v38 = vadd.f32 %v1398_v37, %v1817_v36  ;;  %v524_v39 = vpop.f32.mrb[1].mxu1 }
 0x1c8   : > { %v525_v40 = vadd.f32 %v1817_v36, %v524_v39  ;;  %v1399_v41 = vpop.f32.mrb[2].mxu1 }
 0x1c9   : > { %v527_v42 = vpop.f32.mrb[3].mxu1  ;;  %v540_v44 = vmax.f32 %v533_v38, 0.0 }
 0x1ca   : > { %v528_v43 = vadd.f32 %v1817_v36, %v527_v42  ;;  %v538_v45 = vmax.f32 %v525_v40, 0.0 }
 0x1cb   : > { %v542_v48 = vpack.c.bf16 %v540_v44, %v540_v44 }
 0x1cc   : > { %v539_v46 = vmax.f32 %v528_v43, 0.0 }
 0x1ce   : > { %v541_v47 = vpack.c.bf16 %v539_v46, %v538_v45 }
 0x1d0   : > { %1416 = vmatprep.mubr.bf16.mxu0 %v541_v47 }
 0x1d1   : > { %1417 = vmatmul.mubr.bf16.vlgmr.msra.gmra.mrb[4].mxu0 %v542_v48 }
 0x1d2   : > { %1429 = vmatpush3.bf16.msra.mxu0 %v1668_v2 }
 0x1d3   : > { %1430 = vmatprep.subr.bf16.mxu0 %v1674_v3 }
 0x1d6   : > { %1431 = vmatpush3.bf16.msra.mxu0 %v1674_v3 }
 0x1d7   : > { %1432 = vmatprep.subr.bf16.mxu0 %v1686_v4 }
 0x1da   : > { %1433 = vmatpush3.bf16.msra.mxu0 %v1686_v4 }
 0x1db   : > { %1434 = vmatprep.subr.bf16.mxu0 %v1703_v8 }
 0x1de   : > { %1435 = vmatpush3.bf16.msra.mxu0 %v1703_v8 }
 0x1df   : > { %1436 = vmatprep.subr.bf16.mxu0 %v1716_v11 }
 0x1e2   : > { %1437 = vmatpush3.bf16.msra.mxu0 %v1716_v11 }
 0x1e3   : > { %1438 = vmatprep.subr.bf16.mxu0 %v1725_v12 }
 0x1e6   : > { %1439 = vmatpush3.bf16.msra.mxu0 %v1725_v12 }
 0x1e7   : > { %1440 = vmatprep.subr.bf16.mxu0 %v1733_v13 }
 0x1ea   : > { %1441 = vmatpush3.bf16.msra.mxu0 %v1733_v13 }
 0x1eb   : > { %1442 = vmatprep.subr.bf16.mxu0 %v1740_v14 }
 0x1ee   : > { %1443 = vmatpush3.bf16.msra.mxu0 %v1740_v14 }
 0x1ef   : > { %1468 = vmatprep.subr.bf16.mxu0 %v1657_v0 }
 0x2a4   : > { %v1418_v50 = vpop.f32.mrb[4].mxu0 }
 0x2a5   : > { %v1847_v52 = vadd.f32 %v1418_v50, %v1844_v49  ;;  %v631_v53 = vpop.f32.mrb[5].mxu0 }
 0x2a6   : > { %v1850_v54 = vadd.f32 %v1844_v49, %v631_v53  ;;  %v1419_v55 = vpop.f32.mrb[6].mxu0 }
 0x2a7   : > { %v1853_v56 = vmul.f32 %v645_v51, %v1847_v52  ;;  %v634_v57 = vpop.f32.mrb[7].mxu0 }
 0x2a8   : > { %v1856_v58 = vmul.f32 %v645_v51, %v1850_v54  ;;  %v1859_v59 = vadd.f32 %v1844_v49, %v634_v57 }
 0x2a9   : > { %v651_v61 = vadd.f32 %v1853_v56, %v1698_v7 }
 0x2aa   : > { %v1862_v60 = vmul.f32 %v645_v51, %v1859_v59  ;;  %v649_v62 = vadd.f32 %v1856_v58, %v1694_v5  ;;  %v1915_v51 = vstv %s1838_s12 }
 0x2ab   : > { %v653_v10 = vpack.c.bf16 %v651_v61, %v651_v61 }
 0x2ac   : > { %v650_v63 = vadd.f32 %v1862_v60, %v1696_v6 }
 0x2ae   : > { %v652_v9 = vpack.c.bf16 %v650_v63, %v649_v62 }
 0x2b0   : > { %1424 = vmatprep.mubr.msk.bf16.mxu1 %vm376_vm0, %v652_v9 }
 0x2b1   : > { %1425 = vmatmul.mubr.msk.bf16.vlgmr.msra.gmra.mrb[4].mxu1 %vm376_vm0, %v653_v10 }
 0x2b2   : > { %1449 = vmatpush3.bf16.msra.mxu1 %v1748_v15 }
 0x2b3   : > { %1450 = vmatprep.subr.bf16.mxu1 %v1753_v16 }
 0x2b6   : > { %1451 = vmatpush3.bf16.msra.mxu1 %v1753_v16 }
 0x2b7   : > { %1452 = vmatprep.subr.bf16.mxu1 %v1761_v17 }
 0x2ba   : > { %1453 = vmatpush3.bf16.msra.mxu1 %v1761_v17 }
 0x2bb   : > { %1454 = vmatprep.subr.bf16.mxu1 %v1768_v18 }
 0x2be   : > { %1455 = vmatpush3.bf16.msra.mxu1 %v1768_v18 }
 0x2bf   : > { %1456 = vmatprep.subr.bf16.mxu1 %v1775_v19 }
 0x2c2   : > { %1457 = vmatpush3.bf16.msra.mxu1 %v1775_v19 }
 0x2c3   : > { %1458 = vmatprep.subr.bf16.mxu1 %v1782_v20 }
 0x2c6   : > { %1459 = vmatpush3.bf16.msra.mxu1 %v1782_v20 }
 0x2c7   : > { %1460 = vmatprep.subr.bf16.mxu1 %v1802_v34 }
 0x2ca   : > { %1461 = vmatpush3.bf16.msra.mxu1 %v1802_v34 }
 0x2cb   : > { %1462 = vmatprep.subr.bf16.mxu1 %v1809_v35 }
 0x2ce   : > { %1463 = vmatpush3.bf16.msra.mxu1 %v1809_v35 }
 0x2cf   : > { %1476 = vmatprep.subr.bf16.mxu1 %v1668_v2 }
 0x384   : > { %v1426_v22 = vpop.f32.mrb[4].mxu1 }
 0x385   : > { %v703_v23 = vadd.f32 %v1426_v22, %v1790_v21  ;;  %v694_v24 = vpop.f32.mrb[5].mxu1  ;;  %v816_v22 = vsub.f32 %v1698_v7, %v1853_v56 }
 0x386   : > { %v695_v25 = vadd.f32 %v1790_v21, %v694_v24  ;;  %v1427_v26 = vpop.f32.mrb[6].mxu1  ;;  %v815_v24 = vsub.f32 %v1696_v6, %v1862_v60 }
 0x387   : > { %v697_v27 = vpop.f32.mrb[7].mxu1  ;;  %v710_v29 = vmax.f32 %v703_v23, 0.0  ;;  %v814_v23 = vsub.f32 %v1694_v5, %v1856_v58 }
 0x388   : > { %v698_v28 = vadd.f32 %v1790_v21, %v697_v27  ;;  %v708_v30 = vmax.f32 %v695_v25, 0.0 }
 0x389   : > { %v712_v33 = vpack.c.bf16 %v710_v29, %v710_v29 }
 0x38a   : > { %v709_v31 = vmax.f32 %v698_v28, 0.0 }
 0x38c   : > { %v711_v32 = vpack.c.bf16 %v709_v31, %v708_v30 }
 0x38e   : > { %1444 = vmatprep.mubr.bf16.mxu0 %v711_v32 }
 0x38f   : > { %1445 = vmatmul.mubr.bf16.vlgmr.msra.gmra.mrb[8].mxu0 %v712_v33 }
 0x390   : > { %1469 = vmatpush3.bf16.msra.mxu0 %v1657_v0 }
 0x391   : > { %1470 = vmatprep.subr.bf16.mxu0 %v1662_v1 }
 0x394   : > { %1471 = vmatpush3.bf16.msra.mxu0 %v1662_v1 }
 0x395   : > { %1496 = vmatprep.subr.bf16.mxu0 %v1748_v15 }
 0x462   : > { %v1446_v37 = vpop.f32.mrb[8].mxu0 }
 0x463   : > { %v756_v38 = vadd.f32 %v1446_v37, %v1817_v36  ;;  %v747_v39 = vpop.f32.mrb[9].mxu0 }
 0x464   : > { %v748_v40 = vadd.f32 %v1817_v36, %v747_v39  ;;  %v1447_v41 = vpop.f32.mrb[10].mxu0 }
 0x465   : > { %v750_v42 = vpop.f32.mrb[11].mxu0  ;;  %v763_v44 = vmax.f32 %v756_v38, 0.0 }
 0x466   : > { %v751_v43 = vadd.f32 %v1817_v36, %v750_v42  ;;  %v761_v45 = vmax.f32 %v748_v40, 0.0 }
 0x467   : > { %v765_v48 = vpack.c.bf16 %v763_v44, %v763_v44 }
 0x468   : > { %v762_v46 = vmax.f32 %v751_v43, 0.0 }
 0x46a   : > { %v764_v47 = vpack.c.bf16 %v762_v46, %v761_v45 }
 0x46c   : > { %1464 = vmatprep.mubr.bf16.mxu1 %v764_v47 }
 0x46d   : > { %1465 = vmatmul.mubr.bf16.vlgmr.msra.gmra.mrb[8].mxu1 %v765_v48 }
 0x46e   : > { %1477 = vmatpush3.bf16.msra.mxu1 %v1668_v2 }
 0x46f   : > { %1478 = vmatprep.subr.bf16.mxu1 %v1674_v3 }
 0x472   : > { %1479 = vmatpush3.bf16.msra.mxu1 %v1674_v3 }
 0x473   : > { %1480 = vmatprep.subr.bf16.mxu1 %v1686_v4 }
 0x476   : > { %1481 = vmatpush3.bf16.msra.mxu1 %v1686_v4 }
 0x477   : > { %1482 = vmatprep.subr.bf16.mxu1 %v1703_v8 }
 0x47a   : > { %1483 = vmatpush3.bf16.msra.mxu1 %v1703_v8 }
 0x47b   : > { %1484 = vmatprep.subr.bf16.mxu1 %v1716_v11 }
 0x47e   : > { %1485 = vmatpush3.bf16.msra.mxu1 %v1716_v11 }
 0x47f   : > { %1486 = vmatprep.subr.bf16.mxu1 %v1725_v12 }
 0x482   : > { %1487 = vmatpush3.bf16.msra.mxu1 %v1725_v12 }
 0x483   : > { %1488 = vmatprep.subr.bf16.mxu1 %v1733_v13 }
 0x486   : > { %1489 = vmatpush3.bf16.msra.mxu1 %v1733_v13 }
 0x487   : > { %1490 = vmatprep.subr.bf16.mxu1 %v1740_v14 }
 0x48a   : > { %1491 = vmatpush3.bf16.msra.mxu1 %v1740_v14 }
 0x48b   : > { %1516 = vmatprep.subr.bf16.mxu1 %v1657_v0 }
 0x540   : > { %v1466_v50 = vpop.f32.mrb[8].mxu1 }
 0x541   : > { %v1918_v53 = vadd.f32 %v1466_v50, %v1844_v49  ;;  %v800_v55 = vpop.f32.mrb[9].mxu1 }
 0x542   : > { %v1921_v57 = vadd.f32 %v1844_v49, %v800_v55  ;;  %v1467_v61 = vpop.f32.mrb[10].mxu1 }
 0x543   : > { %v820_v62 = vmul.f32 %v1915_v51, %v1918_v53  ;;  %v803_v63 = vpop.f32.mrb[11].mxu1 }
 0x544   : > { %v818_v9 = vmul.f32 %v1915_v51, %v1921_v57  ;;  %v1928_v10 = vadd.f32 %v1844_v49, %v803_v63 }
 0x545   : > { %v823_v26 = vadd.f32 %v820_v62, %v816_v22 }
 0x546   : > { %v819_v25 = vmul.f32 %v1915_v51, %v1928_v10  ;;  %v821_v27 = vadd.f32 %v818_v9, %v814_v23  ;;  %v987_v23 = vsub.f32 %v1859_v59, %v1928_v10 }
 0x547   : > { %v825_v30 = vpack.c.bf16 %v823_v26, %v823_v26 }
 0x548   : > { %v822_v28 = vadd.f32 %v819_v25, %v815_v24 }
 0x54a   : > { %v824_v29 = vpack.c.bf16 %v822_v28, %v821_v27 }
 0x54c   : > { %1472 = vmatprep.mubr.msk.bf16.mxu0 %vm376_vm0, %v824_v29 }
 0x54d   : > { %1473 = vmatmul.mubr.msk.bf16.vlgmr.msra.gmra.mrb[12].mxu0 %vm376_vm0, %v825_v30 }
 0x54e   : > { %1497 = vmatpush3.bf16.msra.mxu0 %v1748_v15 }
 0x54f   : > { %1498 = vmatprep.subr.bf16.mxu0 %v1753_v16 }
 0x552   : > { %1499 = vmatpush3.bf16.msra.mxu0 %v1753_v16 }
 0x553   : > { %1500 = vmatprep.subr.bf16.mxu0 %v1761_v17 }
 0x556   : > { %1501 = vmatpush3.bf16.msra.mxu0 %v1761_v17 }
 0x557   : > { %1502 = vmatprep.subr.bf16.mxu0 %v1768_v18 }
 0x55a   : > { %1503 = vmatpush3.bf16.msra.mxu0 %v1768_v18 }
 0x55b   : > { %1504 = vmatprep.subr.bf16.mxu0 %v1775_v19 }
 0x55e   : > { %1505 = vmatpush3.bf16.msra.mxu0 %v1775_v19 }
 0x55f   : > { %1506 = vmatprep.subr.bf16.mxu0 %v1782_v20 }
 0x562   : > { %1507 = vmatpush3.bf16.msra.mxu0 %v1782_v20 }
 0x563   : > { %1508 = vmatprep.subr.bf16.mxu0 %v1802_v34 }
 0x566   : > { %1509 = vmatpush3.bf16.msra.mxu0 %v1802_v34 }
 0x567   : > { %1510 = vmatprep.subr.bf16.mxu0 %v1809_v35 }
 0x56a   : > { %1511 = vmatpush3.bf16.msra.mxu0 %v1809_v35 }
 0x56b   : > { %1524 = vmatprep.subr.bf16.mxu0 %v1668_v2 }
 0x620   : > { %v1474_v56 = vpop.f32.mrb[12].mxu0 }
 0x621   : > { %v875_v58 = vadd.f32 %v1474_v56, %v1790_v21  ;;  %v866_v60 = vpop.f32.mrb[13].mxu0 }
 0x622   : > { %v867_v31 = vadd.f32 %v1790_v21, %v866_v60  ;;  %v1475_v32 = vpop.f32.mrb[14].mxu0 }
 0x623   : > { %v869_v33 = vpop.f32.mrb[15].mxu0  ;;  %v882_v38 = vmax.f32 %v875_v58, 0.0 }
 0x624   : > { %v870_v37 = vadd.f32 %v1790_v21, %v869_v33  ;;  %v880_v39 = vmax.f32 %v867_v31, 0.0 }
 0x625   : > { %v884_v42 = vpack.c.bf16 %v882_v38, %v882_v38 }
 0x626   : > { %v881_v40 = vmax.f32 %v870_v37, 0.0 }
 0x628   : > { %v883_v41 = vpack.c.bf16 %v881_v40, %v880_v39 }
 0x62a   : > { %1492 = vmatprep.mubr.bf16.mxu1 %v883_v41 }
 0x62b   : > { %1493 = vmatmul.mubr.bf16.vlgmr.msra.gmra.mrb[12].mxu1 %v884_v42 }
 0x62c   : > { %1517 = vmatpush3.bf16.msra.mxu1 %v1657_v0 }
 0x62d   : > { %1518 = vmatprep.subr.bf16.mxu1 %v1662_v1 }
 0x630   : > { %1519 = vmatpush3.bf16.msra.mxu1 %v1662_v1 }
 0x631   : > { %1544 = vmatprep.subr.bf16.mxu1 %v1748_v15 }
 0x6fe   : > { %v1494_v43 = vpop.f32.mrb[12].mxu1 }
 0x6ff   : > { %v928_v44 = vadd.f32 %v1494_v43, %v1817_v36  ;;  %v919_v45 = vpop.f32.mrb[13].mxu1 }
 0x700   : > { %v920_v46 = vadd.f32 %v1817_v36, %v919_v45  ;;  %v1495_v47 = vpop.f32.mrb[14].mxu1 }
 0x701   : > { %v922_v48 = vpop.f32.mrb[15].mxu1  ;;  %v935_v55 = vmax.f32 %v928_v44, 0.0 }
 0x702   : > { %v923_v50 = vadd.f32 %v1817_v36, %v922_v48  ;;  %v933_v61 = vmax.f32 %v920_v46, 0.0 }
 0x703   : > { %v937_v63 = vpack.c.bf16 %v935_v55, %v935_v55 }
 0x704   : > { %v934_v62 = vmax.f32 %v923_v50, 0.0 }
 0x706   : > { %v936_v0 = vpack.c.bf16 %v934_v62, %v933_v61 }
 0x708   : > { %1512 = vmatprep.mubr.bf16.mxu0 %v936_v0 }
 0x709   : > { %1513 = vmatmul.mubr.bf16.vlgmr.msra.gmra.mrb[16].mxu0 %v937_v63 }
 0x70a   : > { %1525 = vmatpush3.bf16.msra.mxu0 %v1668_v2 }
 0x70b   : > { %1526 = vmatprep.subr.bf16.mxu0 %v1674_v3 }
 0x70e   : > { %1527 = vmatpush3.bf16.msra.mxu0 %v1674_v3  ;;  %v988_v3 = vsub.f32 %v1847_v52, %v1918_v53 }
 0x70f   : > { %1528 = vmatprep.subr.bf16.mxu0 %v1686_v4 }
 0x712   : > { %1529 = vmatpush3.bf16.msra.mxu0 %v1686_v4 }
 0x713   : > { %1530 = vmatprep.subr.bf16.mxu0 %v1703_v8 }
 0x716   : > { %1531 = vmatpush3.bf16.msra.mxu0 %v1703_v8 }
 0x717   : > { %1532 = vmatprep.subr.bf16.mxu0 %v1716_v11 }
 0x71a   : > { %1533 = vmatpush3.bf16.msra.mxu0 %v1716_v11  ;;  %v986_v11 = vsub.f32 %v1850_v54, %v1921_v57 }
 0x71b   : > { %1534 = vmatprep.subr.bf16.mxu0 %v1725_v12 }
 0x71e   : > { %1535 = vmatpush3.bf16.msra.mxu0 %v1725_v12 }
 0x71f   : > { %1536 = vmatprep.subr.bf16.mxu0 %v1733_v13 }
 0x722   : > { %1537 = vmatpush3.bf16.msra.mxu0 %v1733_v13 }
 0x723   : > { %1538 = vmatprep.subr.bf16.mxu0 %v1740_v14 }
 0x726   : > { %1539 = vmatpush3.bf16.msra.mxu0 %v1740_v14 }
 0x7dc   : > { %v1514_v1 = vpop.f32.mrb[16].mxu0 }
 0x7dd   : > { %v1982_v2 = vadd.f32 %v1514_v1, %v1844_v49  ;;  %v972_v4 = vpop.f32.mrb[17].mxu0 }
 0x7de   : > { %v1987_v8 = vadd.f32 %v1844_v49, %v972_v4  ;;  %v1515_v12 = vpop.f32.mrb[18].mxu0 }
 0x7df   : > { %v991_v13 = vadd.f32 %v988_v3, %v1982_v2  ;;  %v975_v9 = vpop.f32.mrb[19].mxu0  ;;  %v1162_v47 = vadd.f32 %v1982_v2, %v1918_v53  ;;  %v1172_v3 = vstv %s355_s16 }
 0x7e0   : > { %v989_v14 = vadd.f32 %v986_v11, %v1987_v8  ;;  %v976_v22 = vadd.f32 %v1844_v49, %v975_v9  ;;  %v1160_v48 = vadd.f32 %v1987_v8, %v1921_v57 }
 0x7e1   : > { %v994_v24 = vmul.f32 %v991_v13, %v1915_v51  ;;  %v1165_v55 = vmul.f32 3.0, %v1162_v47 }
 0x7e2   : > { %v992_v25 = vmul.f32 %v989_v14, %v1915_v51  ;;  %v990_v26 = vadd.f32 %v987_v23, %v976_v22  ;;  %v1161_v50 = vadd.f32 %v976_v22, %v1928_v10  ;;  %v1163_v61 = vmul.f32 3.0, %v1160_v48 }
 0x7e3   : > { %v997_v28 = vadd.f32 %v994_v24, %v1698_v7  ;;  %v1168_v63 = vadd.f32 %v1165_v55, %v1847_v52 }
 0x7e4   : > { %v993_v27 = vmul.f32 %v990_v26, %v1915_v51  ;;  %v995_v29 = vadd.f32 %v992_v25, %v1694_v5  ;;  %v1166_v53 = vadd.f32 %v1163_v61, %v1850_v54 }
 0x7e5   : > { %v999_v58 = vpack.c.bf16 %v997_v28, %v997_v28 }
 0x7e6   : > { %v996_v30 = vadd.f32 %v993_v27, %v1696_v6 }
 0x7e8   : > { %v998_v56 = vpack.c.bf16 %v996_v30, %v995_v29 }
 0x7ea   : > { %1520 = vmatprep.mubr.msk.bf16.mxu1 %vm376_vm0, %v998_v56 }
 0x7eb   : > { %1521 = vmatmul.mubr.msk.bf16.vlgmr.msra.gmra.mrb[16].mxu1 %vm376_vm0, %v999_v58 }
 0x7ec   : > { %1545 = vmatpush3.bf16.msra.mxu1 %v1748_v15 }
 0x7ed   : > { %1546 = vmatprep.subr.bf16.mxu1 %v1753_v16 }
 0x7f0   : > { %1547 = vmatpush3.bf16.msra.mxu1 %v1753_v16 }
 0x7f1   : > { %1548 = vmatprep.subr.bf16.mxu1 %v1761_v17 }
 0x7f4   : > { %1549 = vmatpush3.bf16.msra.mxu1 %v1761_v17 }
 0x7f5   : > { %1550 = vmatprep.subr.bf16.mxu1 %v1768_v18 }
 0x7f8   : > { %1551 = vmatpush3.bf16.msra.mxu1 %v1768_v18 }
 0x7f9   : > { %1552 = vmatprep.subr.bf16.mxu1 %v1775_v19 }
 0x7fc   : > { %1553 = vmatpush3.bf16.msra.mxu1 %v1775_v19 }
 0x7fd   : > { %1554 = vmatprep.subr.bf16.mxu1 %v1782_v20 }
 0x800   : > { %1555 = vmatpush3.bf16.msra.mxu1 %v1782_v20 }
 0x801   : > { %1556 = vmatprep.subr.bf16.mxu1 %v1802_v34 }
 0x804   : > { %1557 = vmatpush3.bf16.msra.mxu1 %v1802_v34 }
 0x805   : > { %1558 = vmatprep.subr.bf16.mxu1 %v1809_v35 }
 0x808   : > { %1559 = vmatpush3.bf16.msra.mxu1 %v1809_v35 }
 0x8be   : > { %v1522_v15 = vpop.f32.mrb[16].mxu1 }
 0x8bf   : > { %v1049_v16 = vadd.f32 %v1522_v15, %v1790_v21  ;;  %v1040_v17 = vpop.f32.mrb[17].mxu1 }
 0x8c0   : > { %v1041_v18 = vadd.f32 %v1790_v21, %v1040_v17  ;;  %v1523_v51 = vpop.f32.mrb[18].mxu1 }
 0x8c1   : > { %v1043_v19 = vpop.f32.mrb[19].mxu1  ;;  %v1056_v31 = vmax.f32 %v1049_v16, 0.0 }
 0x8c2   : > { %v1044_v60 = vadd.f32 %v1790_v21, %v1043_v19  ;;  %v1054_v20 = vmax.f32 %v1041_v18, 0.0 }
 0x8c3   : > { %v1058_v37 = vpack.c.bf16 %v1056_v31, %v1056_v31 }
 0x8c4   : > { %v1055_v32 = vmax.f32 %v1044_v60, 0.0 }
 0x8c6   : > { %v1057_v33 = vpack.c.bf16 %v1055_v32, %v1054_v20 }
 0x8c8   : > { %1540 = vmatprep.mubr.bf16.mxu0 %v1057_v33 }
 0x8c9   : > { %1541 = vmatmul.mubr.bf16.vlgmr.msra.gmra.mrb[20].mxu0 %v1058_v37 }
 0x99c   : > { %v1542_v34 = vpop.f32.mrb[20].mxu0 }
 0x99d   : > { %v1102_v35 = vadd.f32 %v1542_v34, %v1817_v36  ;;  %v1093_v38 = vpop.f32.mrb[21].mxu0 }
 0x99e   : > { %v1094_v39 = vadd.f32 %v1817_v36, %v1093_v38  ;;  %v1543_v40 = vpop.f32.mrb[22].mxu0 }
 0x99f   : > { %v1096_v41 = vpop.f32.mrb[23].mxu0  ;;  %v1109_v43 = vmax.f32 %v1102_v35, 0.0 }
 0x9a0   : > { %v1097_v42 = vadd.f32 %v1817_v36, %v1096_v41  ;;  %v1107_v21 = vmax.f32 %v1094_v39, 0.0  ;;  %v1164_v36 = vmul.f32 3.0, %v1161_v50 }
 0x9a1   : > { %v1111_v46 = vpack.c.bf16 %v1109_v43, %v1109_v43 }
 0x9a2   : > { %v1108_v44 = vmax.f32 %v1097_v42, 0.0  ;;  %v1167_v12 = vadd.f32 %v1164_v36, %v1859_v59 }
 0x9a4   : > { %v1110_v45 = vpack.c.bf16 %v1108_v44, %v1107_v21 }
 0x9a6   : > { %1560 = vmatprep.mubr.bf16.mxu1 %v1110_v45 }
 0x9a7   : > { %1561 = vmatmul.mubr.bf16.vlgmr.msra.gmra.mrb[20].mxu1 %v1111_v46 }
 0xa7a   : > { %v1562_v62 = vpop.f32.mrb[20].mxu1 }
 0xa7b   : > { %v1155_v0 = vadd.f32 %v1562_v62, %v1844_v49  ;;  %v1146_v1 = vpop.f32.mrb[21].mxu1 }
 0xa7c   : > { %v1147_v4 = vadd.f32 %v1844_v49, %v1146_v1  ;;  %v1563_v2 = vpop.f32.mrb[22].mxu1 }
 0xa7d   : > { %v1171_v57 = vadd.f32 %v1168_v63, %v1155_v0  ;;  %v1149_v8 = vpop.f32.mrb[23].mxu1 }
 0xa7e   : > { %v1169_v10 = vadd.f32 %v1166_v53, %v1147_v4  ;;  %v1150_v11 = vadd.f32 %v1844_v49, %v1149_v8 }
 0xa7f   : > { %v1175_v13 = vmul.f32 %v1172_v3, %v1171_v57 }
 0xa80   : > { %v1173_v52 = vmul.f32 %v1172_v3, %v1169_v10  ;;  %v1170_v9 = vadd.f32 %v1167_v12, %v1150_v11 }
 0xa81   : > { %v1178_v14 = vadd.f32 %v1175_v13, %v1698_v7 }
 0xa82   : > { %v1176_v54 = vadd.f32 %v1173_v52, %v1694_v5  ;;  %v1174_v22 = vmul.f32 %v1172_v3, %v1170_v9 }
 0xa83   : > { %1181 = vst.msk [vmem:[%s308_s20 + $0x10] sm:$0xff] %vm376_vm0, %v1178_v14 }
 0xa84   : > { %1179 = vst.msk [vmem:[%s308_s20] sm:$0xff] %vm376_vm0, %v1176_v54  ;;  %v1177_v49 = vadd.f32 %v1174_v22, %v1696_v6 }
 0xa86   : > { %1180 = vst.msk [vmem:[%s308_s20 + $0x8] sm:$0xff] %vm376_vm0, %v1177_v49 }
 0xa87 PF: > { %s19_s29 = sadd.s32 1, %s1596_s29  }
 0xa88   : > { %p16_p4 = scmp.ge.s32.totalorder %s19_s29, 4  }
 0xa8a   :  { %18 = sbr.rel (!%p16_p4) target bundleno = 2 (0x2), region = 82 }

</bundles_post_ra>
